<compile_context>
chip_gen: v7x
topology: tpu7x:2x2x1
jax: 0.10.0
libtpu: 0.0.40
codegen_flags: <defaults>
</compile_context>

<pallas_src>
import jax
import jax.numpy as jnp
from jax.experimental import pallas as pl
from jax.experimental.pallas import tpu as pltpu


def edge_gcn_ring_kernel(x_ref, ef_ref, p_ref, out_ref):
    # Per grid step (one graph): x_ref (N,1), ef_ref (N,F), p_ref (4,F), out_ref (N,1).
    w_row   = p_ref[0:1, :]          # GraphConv weight row (in_feats == 1)
    b_row   = p_ref[1:2, :]          # GraphConv bias row
    wfc_row = p_ref[2:3, :]          # fc weight row (output width 1)
    bfc     = p_ref[3:4, 0:1]        # fc bias scalar, (1,1) slice -> broadcasts

    # X @ W with K=1 is a VPU broadcast multiply; fold GraphConv bias and the width-1
    # fc projection in as well (all pure VPU work, no MXU).
    pre = (x_ref[...] * w_row + ef_ref[...] + b_row) * wfc_row      # (N, F)
    # Lane reduction FIRST, then the ring-graph aggregation: both graph matmuls collapse
    # into one XLU sublane roll of an (N, 1) column (sum and roll commute because the
    # parameter rows are row-invariant).
    s = jnp.sum(pre, axis=1, keepdims=True)                          # (N, 1)
    out_ref[...] = pltpu.roll(s, shift=1, axis=0) + bfc              # out[v] = s[v-1] + b_fc


@jax.jit
def edge_gcn_forward(node_feats, edge_feats, w, b, w_fc, b_fc):
    """Batched EdgeGCN forward on ring graphs (src=i -> dst=(i+1)%N).

    node_feats: (G, N, 1) float, edge_feats: (G, N, F) float.
    Returns (G, N, 1) float32.  jit-ed so all wrapper-side packing fuses.
    """
    g_cnt, n, in_feats = node_feats.shape
    out_feats = w.shape[-1]
    assert in_feats == 1, "module spec: node_feats = randn(N, 1)"
    assert edge_feats.shape == (g_cnt, n, out_feats)

    # Pack every parameter into one small (4, F) VMEM operand: [w; b; w_fc^T; b_fc*ones].
    params = jnp.concatenate(
        [
            w.reshape(1, out_feats),
            b.reshape(1, out_feats),
            w_fc.reshape(1, out_feats),
            jnp.broadcast_to(b_fc.reshape(1, 1), (1, out_feats)),
        ],
        axis=0,
    ).astype(jnp.float32)

    x = node_feats.astype(jnp.float32)
    ef = edge_feats.astype(jnp.float32)

    return pl.pallas_call(
        edge_gcn_ring_kernel,
        out_shape=jax.ShapeDtypeStruct((g_cnt, n, 1), jnp.float32),
        grid=(g_cnt,),
        in_specs=[
            # Leading graph axis squeezed (None) -> kernel sees clean 2-D refs.
            # Full (N, in_feats)/(N, F) blocks are exempt from the (8,128) rule.
            pl.BlockSpec((None, n, in_feats), lambda g: (g, 0, 0)),
            pl.BlockSpec((None, n, out_feats), lambda g: (g, 0, 0)),
            pl.BlockSpec((4, out_feats), lambda g: (0, 0)),
        ],
        out_specs=pl.BlockSpec((None, n, 1), lambda g: (g, 0, 0)),
        compiler_params=pltpu.CompilerParams(dimension_semantics=("parallel",)),
    )(x, ef, params)


# ----------------------------- reference (pure JAX) -----------------------------

def build_ring_graph(n):
    src = jnp.arange(n, dtype=jnp.int32)
    dst = (src + 1) % n
    return src, dst


def build_dense_graph_ops(src, dst, n):
    """Dense A_norm (DGL norm='both') and dst-incidence M.  Reference-only (O(N^2))."""
    e = src.shape[0]
    deg_out = jnp.zeros((n,), jnp.float32).at[src].add(1.0)
    deg_in = jnp.zeros((n,), jnp.float32).at[dst].add(1.0)
    norm_src = jnp.power(jnp.maximum(deg_out, 1.0), -0.5)
    norm_dst = jnp.power(jnp.maximum(deg_in, 1.0), -0.5)
    adj_norm = jnp.zeros((n, n), jnp.float32).at[dst, src].add(norm_src[src] * norm_dst[dst])
    inc = jnp.zeros((n, e), jnp.float32).at[dst, jnp.arange(e)].add(1.0)
    return adj_norm, inc


def reference_forward(node_feats, edge_feats, w, b, w_fc, b_fc):
    n = node_feats.shape[0]
    src, dst = build_ring_graph(n)
    adj_norm, inc = build_dense_graph_ops(src, dst, n)
    h_self = adj_norm @ (node_feats @ w) + b
    h_neigh = inc @ edge_feats
    return (h_self + h_neigh) @ w_fc + b_fc.reshape(1, 1)


if __name__ == "__main__":
    G = 4             # batch of independent ring graphs (amortizes launch overhead)
    N = 16            # nodes per graph (and edges: ring graph)
    IN_FEATS = 1      # node_feats = randn(N, 1) per the module spec
    OUT_FEATS = 32    # GraphConv output width == edge_feat dim so h_self + h_neigh is exact

    key = jax.random.PRNGKey(0)
    k_x, k_e, k_w, k_b, k_wfc, k_bfc = jax.random.split(key, 6)

    node_feats = jax.random.normal(k_x, (G, N, IN_FEATS), dtype=jnp.float32)
    edge_feats = jax.random.normal(k_e, (G, N, OUT_FEATS), dtype=jnp.float32)

    # Deterministic parameters (GraphConv weight/bias, Linear weight/bias).
    w = jax.random.normal(k_w, (IN_FEATS, OUT_FEATS), dtype=jnp.float32) * 0.1
    b = jax.random.normal(k_b, (1, OUT_FEATS), dtype=jnp.float32) * 0.1
    w_fc = jax.random.normal(k_wfc, (OUT_FEATS, 1), dtype=jnp.float32) * 0.1
    b_fc = jax.random.normal(k_bfc, (1, 1), dtype=jnp.float32) * 0.1

    out = edge_gcn_forward(node_feats, edge_feats, w, b, w_fc, b_fc)
    out = jax.block_until_ready(out)

    ref = jax.vmap(
        lambda x_g, ef_g: reference_forward(x_g, ef_g, w, b, w_fc, b_fc)
    )(node_feats, edge_feats)

    assert out.shape == (G, N, 1)
    assert jnp.allclose(out, ref, atol=1e-5, rtol=1e-5), "Pallas output mismatch vs reference"

    print("KERNEL_OK")
</pallas_src>

<mosaic_0001>
module attributes {stable_mosaic.version = 11 : i64} {
  func.func @edge_gcn_ring_kernel(%arg0: i32, %arg1: memref<1x16x1xf32, #tpu.memory_space<vmem>>, %arg2: memref<1x16x32xf32, #tpu.memory_space<vmem>>, %arg3: memref<4x32xf32, #tpu.memory_space<vmem>>, %arg4: memref<1x16x1xf32, #tpu.memory_space<vmem>>) attributes {dimension_semantics = [#tpu.dimension_semantics<parallel>], iteration_bounds = array<i64: 4>, scalar_prefetch = 0 : i64, scratch_operands = 0 : i64, tpu.core_type = #tpu.core_type<tc>, window_params = [{transform_indices = @transform_0, window_bounds = array<i64: 1, 16, 1>}, {transform_indices = @transform_1, window_bounds = array<i64: 1, 16, 32>}, {pipeline_mode = #tpu.pipeline_mode<synchronous>, transform_indices = @transform_2, window_bounds = array<i64: 4, 32>}, {transform_indices = @transform_3, window_bounds = array<i64: 1, 16, 1>}]} {
    %c0 = arith.constant 0 : index
    %c0_0 = arith.constant 0 : index
    %0 = vector.load %arg3[%c0, %c0_0] : memref<4x32xf32, #tpu.memory_space<vmem>>, vector<1x32xf32>
    %c1 = arith.constant 1 : index
    %c0_1 = arith.constant 0 : index
    %1 = vector.load %arg3[%c1, %c0_1] : memref<4x32xf32, #tpu.memory_space<vmem>>, vector<1x32xf32>
    %c2 = arith.constant 2 : index
    %c0_2 = arith.constant 0 : index
    %2 = vector.load %arg3[%c2, %c0_2] : memref<4x32xf32, #tpu.memory_space<vmem>>, vector<1x32xf32>
    %c3 = arith.constant 3 : index
    %c0_3 = arith.constant 0 : index
    %3 = vector.load %arg3[%c3, %c0_3] : memref<4x32xf32, #tpu.memory_space<vmem>>, vector<1x1xf32>
    %c0_4 = arith.constant 0 : index
    %c0_5 = arith.constant 0 : index
    %c0_6 = arith.constant 0 : index
    %4 = vector.load %arg1[%c0_4, %c0_5, %c0_6] : memref<1x16x1xf32, #tpu.memory_space<vmem>>, vector<1x16x1xf32>
    %5 = vector.shape_cast %4 : vector<1x16x1xf32> to vector<16x1xf32>
    %6 = vector.broadcast %5 : vector<16x1xf32> to vector<16x32xf32>
    %7 = vector.broadcast %0 : vector<1x32xf32> to vector<16x32xf32>
    %8 = arith.mulf %6, %7 : vector<16x32xf32>
    %c0_7 = arith.constant 0 : index
    %c0_8 = arith.constant 0 : index
    %c0_9 = arith.constant 0 : index
    %9 = vector.load %arg2[%c0_7, %c0_8, %c0_9] : memref<1x16x32xf32, #tpu.memory_space<vmem>>, vector<1x16x32xf32>
    %10 = vector.shape_cast %9 : vector<1x16x32xf32> to vector<16x32xf32>
    %11 = arith.addf %8, %10 : vector<16x32xf32>
    %12 = vector.broadcast %1 : vector<1x32xf32> to vector<16x32xf32>
    %13 = arith.addf %11, %12 : vector<16x32xf32>
    %14 = vector.broadcast %2 : vector<1x32xf32> to vector<16x32xf32>
    %15 = arith.mulf %13, %14 : vector<16x32xf32>
    %cst = arith.constant dense<0.000000e+00> : vector<16xf32>
    %16 = vector.multi_reduction <add>, %15, %cst [1] : vector<16x32xf32> to vector<16xf32>
    %17 = vector.shape_cast %16 : vector<16xf32> to vector<16x1xf32>
    %c1_i32 = arith.constant 1 : i32
    %18 = tpu.dynamic_rotate %17 by %c1_i32 dim 0 : vector<16x1xf32>, i32 -> vector<16x1xf32>
    %19 = vector.broadcast %3 : vector<1x1xf32> to vector<16x1xf32>
    %20 = arith.addf %18, %19 : vector<16x1xf32>
    %c0_10 = arith.constant 0 : index
    %c0_11 = arith.constant 0 : index
    %c0_12 = arith.constant 0 : index
    %21 = vector.load %arg4[%c0_10, %c0_11, %c0_12] : memref<1x16x1xf32, #tpu.memory_space<vmem>>, vector<1x16x1xf32>
    %22 = vector.shape_cast %21 : vector<1x16x1xf32> to vector<16x1xf32>
    %23 = vector.shape_cast %20 : vector<16x1xf32> to vector<1x16x1xf32>
    tpu.vector_store %arg4[%c0_10, %c0_11, %c0_12], %23 {strides = array<i32>} : memref<1x16x1xf32, #tpu.memory_space<vmem>>, vector<1x16x1xf32>,
    return
  }
  func.func @transform_0(%arg0: i32) -> (i32, i32, i32) {
    %c0_i32 = arith.constant 0 : i32
    %c0_i32_0 = arith.constant 0 : i32
    %c0_i32_1 = arith.constant 0 : i32
    return %arg0, %c0_i32, %c0_i32_0 : i32, i32, i32
  }
  func.func @transform_1(%arg0: i32) -> (i32, i32, i32) {
    %c0_i32 = arith.constant 0 : i32
    %c0_i32_0 = arith.constant 0 : i32
    %c0_i32_1 = arith.constant 0 : i32
    return %arg0, %c0_i32, %c0_i32_0 : i32, i32, i32
  }
  func.func @transform_2(%arg0: i32) -> (i32, i32) {
    %c0_i32 = arith.constant 0 : i32
    %c0_i32_0 = arith.constant 0 : i32
    %c0_i32_1 = arith.constant 0 : i32
    return %c0_i32, %c0_i32_0 : i32, i32
  }
  func.func @transform_3(%arg0: i32) -> (i32, i32, i32) {
    %c0_i32 = arith.constant 0 : i32
    %c0_i32_0 = arith.constant 0 : i32
    %c0_i32_1 = arith.constant 0 : i32
    return %arg0, %c0_i32, %c0_i32_0 : i32, i32, i32
  }
}

</mosaic_0001>

<bundles_post_ra>
// kernel: edge_gcn_forward.1
= control target key start
LH: loop header
LB: loop body
LE: loop exit
PB: predicated region body
PF: predicated region fallthrough
CT: control target
= control target key end

     0   :  { %s378_s12 = smov 0   ;;  %s415_s0 = inlined_call_operand.vmem [shape: f32[4,16,1], index: 0, kind: input, shape index: {}]   ;;  %s416_s1 = inlined_call_operand.vmem [shape: f32[4,16,32], index: 1, kind: input, shape index: {}]   ;;  %s417_s2 = inlined_call_operand.vmem [shape: f32[4,32], index: 2, kind: input, shape index: {}]   ;;  %s418_s3 = inlined_call_operand.vmem [shape: f32[4,16,1], index: 3, kind: output, shape index: {}]  }
   0x1 LB: > { %s319_s13 = sadd.s32 4294967295, %s355_s12   ;;  %p323_p0 = scmp.ge.s32.totalorder %s355_s12, 1  ;;  %s355_s12 = sphi %s378_s12, %s13_s12  }
   0x2   : > { %p147_p1 = scmp.lt.s32.totalorder %s355_s12, 5 }
   0x4   : > { %p148_p2 = pnand %p323_p0, %p147_p1 }
   0x5   : > { %p176_p3 = scmp.lt.s32.totalorder (!%p148_p2), %s319_s13, 3  ;;  %v357_v0 = vmov (!%p148_p2), 0   ;;  %v330_v3 = vld [vmem:[%s417_s2] ss:$0 sm:$0xff] (!%p148_p2)  ;;  %v331_v7 = vld [vmem:[%s417_s2 + $0x1] ss:$0 sm:$0xff] (!%p148_p2)  ;;  %v238_v20 = vlaneseq (!%p148_p2) }
   0x6   : > { %151 = sbr.rel (%p148_p2) target bundleno = 306 (0x132), region = 32  ;;  %348 = vset.pattern.permute.xlu0 (!%p148_p2), %v357_v0  ;;  %v332_v11 = vld [vmem:[%s417_s2 + $0x2] ss:$0 sm:$0xff] (!%p148_p2)  ;;  %vm229_vm0 = vcmask (!%p148_p2), 261120   ;;  %v333_v25 = vld [vmem:[%s417_s2 + $0x3] ss:$0 sm:$0xff] (!%p148_p2) }
   0x7   : > { %v239_v22 = vshrl.u32 (!%p148_p2), %v238_v20, 7  ;;  %vm249_vm2 = vcmask (!%p148_p2), 7168  }
   0x9   : > { %vm240_vm1 = vcmp.lt.s32.totalorder (!%p148_p2), %v239_v22, 1 }
   0xd   : > { %s420_s13 = smov (!%p176_p3, %s319_s13), 3 }
   0xe   : > { %s386_s14 = sshll.u32 %s420_s13, 4 }
   0xf   : > { %s180_s17 = scalar_lea.vmem %s415_s0, %s386_s14  ;;  %s185_s20 = scalar_lea.vmem %s416_s1, %s386_s14 }
  0x10   : > { %v195_v1 = vld [vmem:[%s180_s17] sm:$0xff]  ;;  %v196_v2 = vld [vmem:[%s180_s17 + $0x8] sm:$0xff]  ;;  %s190_s4 = scalar_lea.vmem %s418_s3, %s386_s14 }
  0x11   : > { %199 = vperm.xlu0 %348, %v195_v1   ;;  %v213_v4 = vld [vmem:[%s185_s20] sm:$0xff]  ;;  %v214_v9 = vld [vmem:[%s185_s20 + $0x8] sm:$0xff] }
  0x15   : > { %204 = vperm.xlu0 %348, %v196_v2  }
  0x90   : > { %v200_v5 = vpop.permute.xlu0 %199 }
  0x91   : > { %v211_v6 = vmul.f32 %v330_v3, %v200_v5 }
  0x93   : > { %v215_v8 = vadd.f32 %v213_v4, %v211_v6 }
  0x94   : > { %v205_v10 = vpop.permute.xlu0 %204 }
  0x95   : > { %v212_v12 = vmul.f32 %v330_v3, %v205_v10  ;;  %v221_v13 = vadd.f32 %v331_v7, %v215_v8 }
  0x97   : > { %v216_v14 = vadd.f32 %v214_v9, %v212_v12  ;;  %v227_v15 = vmul.f32 %v332_v11, %v221_v13 }
  0x99   : > { %v230_v16 = vsel %vm229_vm0, %v227_v15, 0.0  ;;  %v222_v17 = vadd.f32 %v331_v7, %v216_v14 }
  0x9a   : > { %231 = vadd.xlane.f32.xlu1 %v230_v16 }
  0x9b   : > { %v228_v18 = vmul.f32 %v332_v11, %v222_v17 }
  0x9d   : > { %v233_v19 = vsel %vm229_vm0, %v228_v18, 0.0 }
  0x9e   : > { %234 = vadd.xlane.f32.xlu1 %v233_v19 }
 0x127   : > { %v232_v21 = vpop.xlane.xlu1 %231 }
 0x128   : > { %v236_v24 = vrot.slane %v232_v21, 7 }
 0x12b   : > { %v235_v23 = vpop.xlane.xlu1 %234 }
 0x12c   : > { %v237_v26 = vrot.slane %v235_v23, 7 }
 0x12e   : > { %v241_v27 = vsel %vm240_vm1, %v236_v24, %v237_v26  ;;  %v242_v28 = vsel %vm240_vm1, %v237_v26, %v236_v24 }
 0x12f   : > { %v247_v29 = vadd.f32 %v333_v25, %v242_v28  ;;  %v248_v30 = vadd.f32 %v333_v25, %v241_v27 }
 0x131   : > { %250 = vst.msk [vmem:[%s190_s4] sm:$0xff] %vm249_vm2, %v247_v29  ;;  %251 = vst.msk [vmem:[%s190_s4 + $0x8] sm:$0xff] %vm249_vm2, %v248_v30 }
 0x132 PF: > { %s13_s12 = sadd.s32 1, %s355_s12  }
 0x133   : > { %p10_p4 = scmp.ge.s32.totalorder %s13_s12, 6  }
 0x135   :  { %12 = sbr.rel (!%p10_p4) target bundleno = 1 (0x1), region = 65 }

</bundles_post_ra>
